<compile_context>
chip_gen: v6e
topology: v6e:2x2x1
jax: 0.10.0
libtpu: 0.0.40
codegen_flags: <defaults>
</compile_context>

<pallas_src>
import jax
import jax.numpy as jnp
from jax.experimental import pallas as pl
from jax.experimental.pallas import tpu as pltpu


def _round_up(x, m):
    return (x + m - 1) // m * m


def _prod(dims):
    p = 1
    for d in dims:
        p *= int(d)
    return p


def _vmem_capacity_bytes():
    # Trace-time hardware query; conservative 64 MiB (v7x per-core) fallback.
    try:
        return int(pltpu.get_tpu_info().vmem_capacity_bytes)
    except Exception:
        return 64 * 1024 * 1024


# ----------------------------- kernels -------------------------------------


def _single_k_kernel(use_bias, mxu_dtype):
    """Whole contraction in one step: o = x @ w (+ b). No scratch accumulator."""

    def kernel(x_ref, w_ref, *rest):
        if use_bias:
            b_ref, o_ref = rest
        else:
            (o_ref,) = rest
        x = x_ref[...]
        w = w_ref[...]
        if mxu_dtype is not None:
            # Cast right before the dot: HBM copies stay in the original dtype,
            # the MXU runs natively (bf16) with fp32 accumulation.
            x = x.astype(mxu_dtype)
            w = w.astype(mxu_dtype)
        acc = jnp.dot(x, w, preferred_element_type=jnp.float32)
        if use_bias:
            acc = acc + b_ref[...].astype(jnp.float32)
        o_ref[...] = acc.astype(o_ref.dtype)

    return kernel


def _multi_k_kernel(use_bias, mxu_dtype):
    """Tiled matmul with fp32 accumulator; bias folded into the k==0 init."""

    def kernel(x_ref, w_ref, *rest):
        if use_bias:
            b_ref, o_ref, acc_ref = rest
        else:
            o_ref, acc_ref = rest
        k = pl.program_id(2)

        @pl.when(k == 0)
        def _():
            if use_bias:
                acc_ref[...] = jnp.broadcast_to(
                    b_ref[...].astype(jnp.float32), acc_ref.shape
                )
            else:
                acc_ref[...] = jnp.zeros_like(acc_ref)

        x = x_ref[...]
        w = w_ref[...]
        if mxu_dtype is not None:
            x = x.astype(mxu_dtype)
            w = w.astype(mxu_dtype)
        acc_ref[...] += jnp.dot(x, w, preferred_element_type=jnp.float32)

        @pl.when(k == pl.num_programs(2) - 1)
        def _():
            o_ref[...] = acc_ref[...].astype(o_ref.dtype)

    return kernel


# --------------------------- tile planning ----------------------------------


def _plan_tiles(M, K, N, x_bytes, w_bytes, b_bytes, o_bytes, use_bias):
    """Balanced, alignment-aware tiles sized against a generation-aware budget.

    Returns (tm, tk, tn, planned_vmem_bytes).
    """
    vmem = _vmem_capacity_bytes()
    budget = int(vmem * 0.45)  # headroom for compiler scratch / semaphores

    m8 = _round_up(M, 8)
    k128 = _round_up(K, 128)
    n128 = _round_up(N, 128)

    TM_MAX, TN_MAX, TK_MAX = 512, 1024, 1024  # tm=512: v6e roofline crossing

    def balanced(padded, align, cap):
        """Equal-size, `align`-multiple blocks of at most ~cap covering `padded`."""
        num = max(1, -(-padded // cap))
        tile = _round_up(-(-padded // num), align)
        return tile, num

    def pick_k(cap):
        if K <= cap:          # single block == full K: zero K padding
            return K, 1
        return balanced(k128, 128, cap)

    def pick_m(cap):
        if M <= cap:          # single block == full M: zero M padding
            return M, 1
        return balanced(m8, 8, cap)

    def usage(tm_, tk_, tn_, nk_):
        # VMEM tiles are laid out in (8,128) groups -> round for honesty.
        tm_r, tk_r, tn_r = _round_up(tm_, 8), _round_up(tk_, 128), _round_up(tn_, 128)
        u = (2 * tm_r * tk_r * x_bytes          # x block, double-buffered
             + 2 * tk_r * tn_r * w_bytes        # w block, double-buffered
             + 2 * tm_r * tn_r * o_bytes)       # out block, double-buffered
        if nk_ > 1:
            u += tm_r * tn_r * 4                # fp32 accumulator scratch
        if use_bias:
            u += 2 * 8 * tn_r * b_bytes         # bias row (8-sublane padded)
        return u

    tk, nk = pick_k(TK_MAX)
    tm, nm = pick_m(TM_MAX)

    # N tile: full (weight-strip) N whenever it actually fits the VMEM budget
    # (capacity-driven -- ~2x larger threshold on 128-MiB chips than on v7x);
    # otherwise balanced 128-aligned blocks of at most 1024 lanes.
    if N <= TN_MAX or usage(tm, tk, n128, nk) <= budget:
        if N <= max(TN_MAX, n128):
            tn, nn = N, 1       # single block == full N: zero N padding
        else:
            tn, nn = n128, 1
    else:
        tn, nn = balanced(n128, 128, TN_MAX)

    # v7x (2 TensorCores, ~64-MiB VMEM): guarantee >=2 parallel output blocks
    # for non-tiny problems so a 1x1(xK) grid doesn't idle half the chip.
    two_core_chip = vmem <= 80 * 1024 * 1024
    if two_core_chip and nm * nn == 1:
        if m8 >= 512:
            tm, nm = pick_m(_round_up(-(-m8 // 2), 8))
        elif n128 >= 512:
            tn, nn = balanced(n128, 128, _round_up(-(-n128 // 2), 128))

    # Shrink (re-balance) until the double-buffered working set fits the budget.
    while usage(tm, tk, tn, nk) > budget:
        if _round_up(tk, 128) > 128:
            tk, nk = pick_k(max(128, _round_up(tk, 128) // 2))
        elif _round_up(tn, 128) > 128:
            tn, nn = balanced(n128, 128, max(128, _round_up(tn, 128) // 2))
        elif _round_up(tm, 8) > 8:
            tm, nm = pick_m(max(8, _round_up(tm, 8) // 2))
        else:
            break

    return tm, tk, tn, usage(tm, tk, tn, nk)


# ----------------------------- pallas_call ----------------------------------


def _matmul_bias(x2d, w2d, b2d, *, tm, tn, tk, out_dtype, mxu_dtype, planned_vmem):
    Mp, Kp = x2d.shape
    _, Np = w2d.shape
    gi, gj, gk = Mp // tm, Np // tn, Kp // tk
    use_bias = b2d is not None

    cost = pl.CostEstimate(
        flops=2 * Mp * Np * Kp,
        transcendentals=0,
        bytes_accessed=(
            x2d.size * x2d.dtype.itemsize
            + w2d.size * w2d.dtype.itemsize
            + (b2d.size * b2d.dtype.itemsize if use_bias else 0)
            + Mp * Np * jnp.dtype(out_dtype).itemsize
        ),
    )

    vmem_cap = _vmem_capacity_bytes()
    if vmem_cap > 96 * 1024 * 1024:       # v5e / v6e: 128-MiB physical VMEM
        vmem_limit = min(int(vmem_cap * 0.85), 100 * 1024 * 1024)
    else:                                 # v7x: 64-MiB -- usage-derived + margin
        vmem_limit = min(48 * 1024 * 1024,
                         max(32 * 1024 * 1024, int(planned_vmem) + 16 * 1024 * 1024))

    def build(single_buffer_invariant):
        def spec(shape, index_map, invariant):
            # Single-buffer blocks whose index map never changes over the grid
            # (frees VMEM; most useful on v7x's 64-MiB VMEM).
            if single_buffer_invariant and invariant:
                return pl.BlockSpec(shape, index_map, pipeline_mode=pl.Buffered(1))
            return pl.BlockSpec(shape, index_map)

        if gk == 1:
            in_specs = [
                spec((tm, tk), lambda i, j: (i, 0), gi == 1),
                spec((tk, tn), lambda i, j: (0, j), gj == 1),
            ]
            if use_bias:
                in_specs.append(spec((1, tn), lambda i, j: (0, j), gj == 1))
            return pl.pallas_call(
                _single_k_kernel(use_bias, mxu_dtype),
                out_shape=jax.ShapeDtypeStruct((Mp, Np), out_dtype),
                grid_spec=pltpu.PrefetchScalarGridSpec(
                    num_scalar_prefetch=0,
                    grid=(gi, gj),
                    in_specs=in_specs,
                    out_specs=pl.BlockSpec((tm, tn), lambda i, j: (i, j)),
                ),
                compiler_params=pltpu.CompilerParams(
                    dimension_semantics=("parallel", "parallel"),
                    vmem_limit_bytes=vmem_limit,
                ),
                cost_estimate=cost,
            )

        in_specs = [
            spec((tm, tk), lambda i, j, k: (i, k), False),
            spec((tk, tn), lambda i, j, k: (k, j), False),
        ]
        if use_bias:
            in_specs.append(spec((1, tn), lambda i, j, k: (0, j), gj == 1))
        return pl.pallas_call(
            _multi_k_kernel(use_bias, mxu_dtype),
            out_shape=jax.ShapeDtypeStruct((Mp, Np), out_dtype),
            grid_spec=pltpu.PrefetchScalarGridSpec(
                num_scalar_prefetch=0,
                grid=(gi, gj, gk),
                in_specs=in_specs,
                out_specs=pl.BlockSpec((tm, tn), lambda i, j, k: (i, j)),
                scratch_shapes=[pltpu.VMEM((tm, tn), jnp.float32)],
            ),
            compiler_params=pltpu.CompilerParams(
                dimension_semantics=("parallel", "parallel", "arbitrary"),
                vmem_limit_bytes=vmem_limit,
            ),
            cost_estimate=cost,
        )

    operands = (x2d, w2d) + ((b2d,) if use_bias else ())
    try:
        return build(True)(*operands)
    except Exception:
        # Fallback for Pallas versions that reject Buffered(1) specs.
        return build(False)(*operands)


# ------------------------------ public API ----------------------------------


def dense_einsum(x, kernel, bias=None, *, num_summed_dims=1,
                 compute_dtype=jnp.bfloat16):
    """DenseEinsum forward.

    x:      (batch, seq, *summed_dims)                    (free_input_dims = 2)
    kernel: (*summed_dims, *output_shape)
    bias:   output_shape or None
    compute_dtype: MXU input dtype (default bf16: native MXU rate, fp32
      accumulation, output keeps x.dtype).  Pass None for exact fp32 semantics.
    returns (batch, seq, *output_shape)
    """
    lead_dims = x.shape[: x.ndim - num_summed_dims]
    summed_dims = x.shape[x.ndim - num_summed_dims:]
    assert tuple(kernel.shape[:num_summed_dims]) == tuple(summed_dims)
    out_dims = kernel.shape[num_summed_dims:]

    M = _prod(lead_dims)
    K = _prod(summed_dims)
    N = _prod(out_dims)

    out_dtype = x.dtype
    x2d = x.reshape(M, K)
    w2d = kernel.reshape(K, N)
    use_bias = bias is not None
    b2d = bias.reshape(1, N) if use_bias else None

    # In-kernel cast only when it changes the dtype (keeps HBM copies as-is).
    mxu_dtype = None
    if compute_dtype is not None and jnp.dtype(compute_dtype) != jnp.dtype(x2d.dtype):
        mxu_dtype = compute_dtype

    tm, tk, tn, planned_vmem = _plan_tiles(
        M, K, N,
        x2d.dtype.itemsize, w2d.dtype.itemsize,
        (b2d.dtype.itemsize if use_bias else 0),
        jnp.dtype(out_dtype).itemsize,
        use_bias,
    )

    # Minimal padding: only up to the chosen (balanced / alignment) tiles, and
    # none at all when a dimension is covered by a single full-extent block.
    Mp, Kp, Np = _round_up(M, tm), _round_up(K, tk), _round_up(N, tn)
    if (Mp, Kp) != (M, K):
        x2d = jnp.pad(x2d, ((0, Mp - M), (0, Kp - K)))
    if (Kp, Np) != (K, N):
        w2d = jnp.pad(w2d, ((0, Kp - K), (0, Np - N)))
    if use_bias and Np != N:
        b2d = jnp.pad(b2d, ((0, 0), (0, Np - N)))

    out2d = _matmul_bias(x2d, w2d, b2d, tm=tm, tn=tn, tk=tk,
                         out_dtype=out_dtype, mxu_dtype=mxu_dtype,
                         planned_vmem=planned_vmem)
    if (Mp, Np) != (M, N):
        out2d = out2d[:M, :N]
    return out2d.reshape(tuple(lead_dims) + tuple(out_dims))


def dense_einsum_reference(x, kernel, bias=None):
    # einsum string for free_input_dims=2, bound=1, output_dims=2: "abc,cde->abde"
    ret = jnp.einsum("abc,cde->abde", x, kernel,
                     precision=jax.lax.Precision.HIGHEST)
    if bias is not None:
        ret = ret + bias
    return ret


if __name__ == "__main__":
    key = jax.random.PRNGKey(0)
    kx, kw, kx2, kw2, kb2 = jax.random.split(key, 5)

    # Module-style shapes: input_shape=(H,)=32, output_shape=(NH, HD)=(4, 16),
    # free input dims (batch, seq) = (2, 8).
    B, S, H = 2, 8, 32
    NH, HD = 4, 16
    limit = 0.1  # module default limit=0 would give an all-zero kernel

    # --- Case 1: exact fp32 module semantics (compute_dtype=None), with bias.
    #     Single-K kernel, no padding anywhere (all dims fit single blocks). ---
    x = jax.random.normal(kx, (B, S, H), dtype=jnp.float32)
    kernel = jax.random.uniform(kw, (H, NH, HD), dtype=jnp.float32,
                                minval=-limit, maxval=limit)
    bias = jnp.zeros((NH, HD), dtype=jnp.float32)  # bias_initializer='zeros'
    out = jax.block_until_ready(dense_einsum(x, kernel, bias, compute_dtype=None))
    ref = dense_einsum_reference(x, kernel, bias)
    assert out.shape == (B, S, NH, HD), out.shape
    assert jnp.allclose(out, ref, atol=1e-5, rtol=1e-5), "mismatch (case 1)"

    # --- Case 2: K=1280 -> balanced two-step reduction (tk=640, zero K padding),
    #     bias folded into accumulator init, default bf16 MXU path. ---
    H2 = 1280
    x2 = jax.random.normal(kx2, (B, S, H2), dtype=jnp.float32)
    kernel2 = jax.random.uniform(kw2, (H2, NH, HD), dtype=jnp.float32,
                                 minval=-limit, maxval=limit)
    bias2 = 0.1 * jax.random.normal(kb2, (NH, HD), dtype=jnp.float32)
    out2 = jax.block_until_ready(dense_einsum(x2, kernel2, bias2))
    ref2 = dense_einsum_reference(x2, kernel2, bias2)
    assert out2.shape == (B, S, NH, HD), out2.shape
    assert jnp.allclose(out2, ref2, atol=6e-2, rtol=6e-2), "mismatch (case 2)"

    # --- Case 3: use_bias=False path (no bias operand, zero-init accumulator). ---
    out3 = jax.block_until_ready(dense_einsum(x2, kernel2, None))
    ref3 = dense_einsum_reference(x2, kernel2, None)
    assert out3.shape == (B, S, NH, HD), out3.shape
    assert jnp.allclose(out3, ref3, atol=6e-2, rtol=6e-2), "mismatch (case 3)"

    print("KERNEL_OK")
</pallas_src>

<mosaic_0001>
module attributes {stable_mosaic.version = 11 : i64} {
  func.func @kernel(%arg0: i32, %arg1: i32, %arg2: memref<16x32xf32, #tpu.memory_space<vmem>>, %arg3: memref<32x64xf32, #tpu.memory_space<vmem>>, %arg4: memref<1x64xf32, #tpu.memory_space<vmem>>, %arg5: memref<16x64xf32, #tpu.memory_space<vmem>>) attributes {dimension_semantics = [#tpu.dimension_semantics<parallel>, #tpu.dimension_semantics<parallel>], iteration_bounds = array<i64: 1, 1>, scalar_prefetch = 0 : i64, scratch_operands = 0 : i64, tpu.core_type = #tpu.core_type<tc>, window_params = [{pipeline_mode = #tpu.pipeline_mode<synchronous>, transform_indices = @transform_0, window_bounds = array<i64: 16, 32>}, {pipeline_mode = #tpu.pipeline_mode<synchronous>, transform_indices = @transform_1, window_bounds = array<i64: 32, 64>}, {pipeline_mode = #tpu.pipeline_mode<synchronous>, transform_indices = @transform_2, window_bounds = array<i64: 1, 64>}, {transform_indices = @transform_3, window_bounds = array<i64: 16, 64>}]} {
    %c0 = arith.constant 0 : index
    %c0_0 = arith.constant 0 : index
    %0 = vector.load %arg2[%c0, %c0_0] : memref<16x32xf32, #tpu.memory_space<vmem>>, vector<16x32xf32>
    %c0_1 = arith.constant 0 : index
    %c0_2 = arith.constant 0 : index
    %1 = vector.load %arg3[%c0_1, %c0_2] : memref<32x64xf32, #tpu.memory_space<vmem>>, vector<32x64xf32>
    %cst = arith.constant dense<0.000000e+00> : vector<16x64xf32>
    %2 = tpu.matmul %0, %1, %cst {dimension_numbers = #tpu.dot_dimension_numbers<[1], [0], [0], [1], [0, 0, 1, 1], [], []>} : vector<16x32xf32>, vector<32x64xf32>, vector<16x64xf32> -> vector<16x64xf32>
    %c0_3 = arith.constant 0 : index
    %c0_4 = arith.constant 0 : index
    %3 = vector.load %arg4[%c0_3, %c0_4] : memref<1x64xf32, #tpu.memory_space<vmem>>, vector<1x64xf32>
    %4 = vector.broadcast %3 : vector<1x64xf32> to vector<16x64xf32>
    %5 = arith.addf %2, %4 : vector<16x64xf32>
    %c0_5 = arith.constant 0 : index
    %c0_6 = arith.constant 0 : index
    %6 = vector.load %arg5[%c0_5, %c0_6] : memref<16x64xf32, #tpu.memory_space<vmem>>, vector<16x64xf32>
    tpu.vector_store %arg5[%c0_5, %c0_6], %5 {strides = array<i32>} : memref<16x64xf32, #tpu.memory_space<vmem>>, vector<16x64xf32>,
    return
  }
  func.func @transform_0(%arg0: i32, %arg1: i32) -> (i32, i32) {
    %c0_i32 = arith.constant 0 : i32
    %c0_i32_0 = arith.constant 0 : i32
    return %arg0, %c0_i32 : i32, i32
  }
  func.func @transform_1(%arg0: i32, %arg1: i32) -> (i32, i32) {
    %c0_i32 = arith.constant 0 : i32
    %c0_i32_0 = arith.constant 0 : i32
    return %c0_i32, %arg1 : i32, i32
  }
  func.func @transform_2(%arg0: i32, %arg1: i32) -> (i32, i32) {
    %c0_i32 = arith.constant 0 : i32
    %c0_i32_0 = arith.constant 0 : i32
    return %c0_i32, %arg1 : i32, i32
  }
  func.func @transform_3(%arg0: i32, %arg1: i32) -> (i32, i32) {
    %c0_i32 = arith.constant 0 : i32
    return %arg0, %arg1 : i32, i32
  }
}

module attributes {stable_mosaic.version = 11 : i64} {
  func.func @kernel(%arg0: i32, %arg1: i32, %arg2: memref<16x32xf32, #tpu.memory_space<vmem>>, %arg3: memref<32x64xf32, #tpu.memory_space<vmem>>, %arg4: memref<1x64xf32, #tpu.memory_space<vmem>>, %arg5: memref<16x64xf32, #tpu.memory_space<vmem>>) attributes {dimension_semantics = [#tpu.dimension_semantics<parallel>, #tpu.dimension_semantics<parallel>], iteration_bounds = array<i64: 1, 1>, scalar_prefetch = 0 : i64, scratch_operands = 0 : i64, tpu.core_type = #tpu.core_type<tc>, window_params = [{transform_indices = @transform_0, window_bounds = array<i64: 16, 32>}, {transform_indices = @transform_1, window_bounds = array<i64: 32, 64>}, {transform_indices = @transform_2, window_bounds = array<i64: 1, 64>}, {transform_indices = @transform_3, window_bounds = array<i64: 16, 64>}]} {
    %c0 = arith.constant 0 : index
    %c0_0 = arith.constant 0 : index
    %0 = vector.load %arg2[%c0, %c0_0] : memref<16x32xf32, #tpu.memory_space<vmem>>, vector<16x32xf32>
    %c0_1 = arith.constant 0 : index
    %c0_2 = arith.constant 0 : index
    %1 = vector.load %arg3[%c0_1, %c0_2] : memref<32x64xf32, #tpu.memory_space<vmem>>, vector<32x64xf32>
    %cst = arith.constant dense<0.000000e+00> : vector<16x64xf32>
    %2 = tpu.matmul %0, %1, %cst {dimension_numbers = #tpu.dot_dimension_numbers<[1], [0], [0], [1], [0, 0, 1, 1], [], []>} : vector<16x32xf32>, vector<32x64xf32>, vector<16x64xf32> -> vector<16x64xf32>
    %c0_3 = arith.constant 0 : index
    %c0_4 = arith.constant 0 : index
    %3 = vector.load %arg4[%c0_3, %c0_4] : memref<1x64xf32, #tpu.memory_space<vmem>>, vector<1x64xf32>
    %4 = vector.broadcast %3 : vector<1x64xf32> to vector<16x64xf32>
    %5 = arith.addf %2, %4 : vector<16x64xf32>
    %c0_5 = arith.constant 0 : index
    %c0_6 = arith.constant 0 : index
    %6 = vector.load %arg5[%c0_5, %c0_6] : memref<16x64xf32, #tpu.memory_space<vmem>>, vector<16x64xf32>
    tpu.vector_store %arg5[%c0_5, %c0_6], %5 {strides = array<i32>} : memref<16x64xf32, #tpu.memory_space<vmem>>, vector<16x64xf32>,
    return
  }
  func.func @transform_0(%arg0: i32, %arg1: i32) -> (i32, i32) {
    %c0_i32 = arith.constant 0 : i32
    %c0_i32_0 = arith.constant 0 : i32
    return %arg0, %c0_i32 : i32, i32
  }
  func.func @transform_1(%arg0: i32, %arg1: i32) -> (i32, i32) {
    %c0_i32 = arith.constant 0 : i32
    %c0_i32_0 = arith.constant 0 : i32
    return %c0_i32, %arg1 : i32, i32
  }
  func.func @transform_2(%arg0: i32, %arg1: i32) -> (i32, i32) {
    %c0_i32 = arith.constant 0 : i32
    %c0_i32_0 = arith.constant 0 : i32
    return %c0_i32, %arg1 : i32, i32
  }
  func.func @transform_3(%arg0: i32, %arg1: i32) -> (i32, i32) {
    %c0_i32 = arith.constant 0 : i32
    return %arg0, %arg1 : i32, i32
  }
}

</mosaic_0001>

<bundles_post_ra>
// kernel: tpu_custom_call.1
= control target key start
LH: loop header
LB: loop body
LE: loop exit
PB: predicated region body
PF: predicated region fallthrough
CT: control target
= control target key end

     0   :  { %8 = vsyncpa [#allocation3], 0  ;;  %s298_s0 = inlined_call_operand.hbm [shape: f32[16,32], index: 0, kind: input, shape index: {}]   ;;  %s299_s1 = inlined_call_operand.hbm [shape: f32[32,64], index: 1, kind: input, shape index: {}]   ;;  %s300_s2 = inlined_call_operand.vmem [shape: f32[1,64], index: 2, kind: input, shape index: {}]   ;;  %s301_s3 = inlined_call_operand.hbm [shape: f32[16,64], index: 3, kind: output, shape index: {}]  }
   0x1   :  { %9 = vsyncpa [#allocation6], 0 }
   0x2   :  { %10 = vsyncpa [#allocation4], 0  ;;  %s250_s12 = smov [#allocation2]  }
   0x3   :  { %s16_s13 = sshll.u32 %s250_s12, 4  ;;  %s17_s13 = int_to_ptr.vmem [resolvable:$true] %s16_s13 }
   0x4   :  { %s192_s14 = scalar_lea.vmem %s17_s13, 256  ;;  %p197_p1 = scmp.lt.s32.totalorder %s17_s13, %s17_s13 }
   0x5   :  { %p193_p0 = scmp.ne.s32.totalorder %s17_s13, %s192_s14  ;;  %p198_p2 = scmp.lt.s32.totalorder %s192_s14, %s192_s14 }
   0x7   :  { %p199_p3 = por %p198_p2, %p197_p1 }
   0x9   :  { %p200_p4 = pnand %p199_p3, %p193_p0 }
   0xb   :  { %203 = shalt.err (!%p200_p4)
}
   0xc   :  { %s251_s15 = smov 128   ;;  %s252_s16 = smov 8  }
   0xd   :  { %22 = dma.hbm_to_vmem [thread:$0]  %s298_s0, 256, %s17_s13, [#allocation3], %s251_s15, %s251_s15, %s252_s16  }
   0xe   :  { %s253_s19 = smov [#allocation5]  }
   0xf   :  { %s28_s20 = sshll.u32 %s253_s19, 4  ;;  %s29_s20 = int_to_ptr.vmem [resolvable:$true] %s28_s20 }
  0x10   :  { %s212_s21 = scalar_lea.vmem %s29_s20, 512  ;;  %p217_p6 = scmp.lt.s32.totalorder %s29_s20, %s29_s20 }
  0x11   :  { %p213_p5 = scmp.ne.s32.totalorder %s29_s20, %s212_s21  ;;  %p218_p7 = scmp.lt.s32.totalorder %s212_s21, %s212_s21 }
  0x13   :  { %p219_p8 = por %p218_p7, %p217_p6 }
  0x15   :  { %p220_p9 = pnand %p219_p8, %p213_p5 }
  0x17   :  { %223 = shalt.err (!%p220_p9)
}
  0x18   :  { %34 = dma.hbm_to_vmem [thread:$0]  %s299_s1, 512, %s29_s20, [#allocation6], %s251_s15, %s251_s15, %s252_s16  }
  0x19   :  { %244 = dma.done.wait [#allocation3], 256  }
  0x1a   :  { %245 = vsyncadd [#allocation3], 4294967040 }
  0x1b   :  { %246 = dma.done.wait [#allocation6], 512  }
  0x1c   :  { %247 = vsyncadd [#allocation6], 4294966784  ;;  %vm56_vm0 = vcmask 261120   ;;  %v48_v0 = vld [vmem:[#allocation5 + $0x18] sm:$0xff]  ;;  %v47_v1 = vld [vmem:[#allocation5 + $0x10] sm:$0xff]  ;;  %vm138_vm1 = vcmask 523264  }
  0x1d   :  { %168 = vmatprep.subr.mxu0 %v48_v0  ;;  %v43_v2 = vld [vmem:[#allocation2] sm:$0xff]  ;;  %v46_v3 = vld [vmem:[#allocation5 + $0x8] sm:$0xff]  ;;  %v45_v4 = vld [vmem:[#allocation5] sm:$0xff]  ;;  %s254_s24 = smov [#allocation7]  }
  0x1e   :  { %169 = vmatpush3.msra.mxu0 %v48_v0  ;;  %176 = vmatprep.mubr.msk.f32.mxu0 %vm56_vm0, %v43_v2  ;;  %v44_v5 = vld [vmem:[#allocation2 + $0x8] sm:$0xff]  ;;  %v159_v6 = vld [vmem:[%s300_s2] ss:$0 sm:$0xff]  ;;  %s146_s25 = sshll.u32 %s254_s24, 4  ;;  %s147_s25 = int_to_ptr.vmem [resolvable:$true] %s146_s25 }
  0x1f   :  { %170 = vmatprep.subr.mxu0 %v47_v1  ;;  %s224_s26 = scalar_lea.vmem %s147_s25, 256  ;;  %p229_p11 = scmp.lt.s32.totalorder %s147_s25, %s147_s25 }
  0x20   :  { %171 = vmatpush3.msra.mxu0 %v47_v1  ;;  %p225_p10 = scmp.ne.s32.totalorder %s147_s25, %s224_s26  ;;  %p230_p12 = scmp.lt.s32.totalorder %s224_s26, %s224_s26 }
  0x21   :  { %172 = vmatprep.subr.mxu0 %v46_v3 }
  0x22   :  { %173 = vmatpush3.msra.mxu0 %v46_v3  ;;  %p231_p13 = por %p230_p12, %p229_p11 }
  0x23   :  { %174 = vmatprep.subr.mxu0 %v45_v4 }
  0x24   :  { %175 = vmatpush3.msra.mxu0 %v45_v4  ;;  %p232_p0 = pnand %p231_p13, %p225_p10 }
  0x25   :  { %177 = vmatmul.mubr.msk.f32.vlgmr.msra.gmra.mxu0 %vm56_vm0, %v44_v5 }
  0xe5   :  { %v178_v7 = vpop.f32.mrf.mxu0 }
  0xe6   :  { %v135_v8 = vadd.f32 %v178_v7, %v159_v6 }
  0xe7   :  { %v129_v9 = vpop.f32.mrf.mxu0 }
  0xe8   :  { %v130_v10 = vadd.f32 %v159_v6, %v129_v9  ;;  %140 = vst.msk [vmem:[#allocation7 + $0x8] sm:$0xff] %vm138_vm1, %v135_v8 }
  0xea   :  { %139 = vst.msk [vmem:[#allocation7] sm:$0xff] %vm138_vm1, %v130_v10 }
  0xeb   :  { %235 = shalt.err (!%p232_p0)
}
  0xec   :  { %152 = dma.vmem_to_hbm [thread:$0]  %s147_s25, 256, %s301_s3, [#allocation4], %s251_s15, %s251_s15, %s252_s16  }
  0xed   :  { %248 = dma.done.wait [#allocation4], 256  }
  0xee   :  { %249 = vsyncadd [#allocation4], 4294967040 }
  0xef   :  { %156 = vsyncpa [#allocation3], 1 }
  0xf0   :  { %157 = vsyncpa [#allocation6], 1 }
  0xf1   :  { %158 = vsyncpa [#allocation4], 1 }

// kernel: tpu_custom_call.1
= control target key start
LH: loop header
LB: loop body
LE: loop exit
PB: predicated region body
PF: predicated region fallthrough
CT: control target
= control target key end

     0   :  { %8 = vsyncpa [#allocation3], 0  ;;  %s298_s0 = inlined_call_operand.hbm [shape: f32[16,32], index: 0, kind: input, shape index: {}]   ;;  %s299_s1 = inlined_call_operand.hbm [shape: f32[32,64], index: 1, kind: input, shape index: {}]   ;;  %s300_s2 = inlined_call_operand.vmem [shape: f32[1,64], index: 2, kind: input, shape index: {}]   ;;  %s301_s3 = inlined_call_operand.hbm [shape: f32[16,64], index: 3, kind: output, shape index: {}]  }
   0x1   :  { %9 = vsyncpa [#allocation6], 0 }
   0x2   :  { %10 = vsyncpa [#allocation4], 0  ;;  %s250_s12 = smov [#allocation2]  }
   0x3   :  { %s16_s13 = sshll.u32 %s250_s12, 4  ;;  %s17_s13 = int_to_ptr.vmem [resolvable:$true] %s16_s13 }
   0x4   :  { %s192_s14 = scalar_lea.vmem %s17_s13, 256  ;;  %p197_p1 = scmp.lt.s32.totalorder %s17_s13, %s17_s13 }
   0x5   :  { %p193_p0 = scmp.ne.s32.totalorder %s17_s13, %s192_s14  ;;  %p198_p2 = scmp.lt.s32.totalorder %s192_s14, %s192_s14 }
   0x7   :  { %p199_p3 = por %p198_p2, %p197_p1 }
   0x9   :  { %p200_p4 = pnand %p199_p3, %p193_p0 }
   0xb   :  { %203 = shalt.err (!%p200_p4)
}
   0xc   :  { %s251_s15 = smov 128   ;;  %s252_s16 = smov 8  }
   0xd   :  { %22 = dma.hbm_to_vmem [thread:$0]  %s298_s0, 256, %s17_s13, [#allocation3], %s251_s15, %s251_s15, %s252_s16  }
   0xe   :  { %s253_s19 = smov [#allocation5]  }
   0xf   :  { %s28_s20 = sshll.u32 %s253_s19, 4  ;;  %s29_s20 = int_to_ptr.vmem [resolvable:$true] %s28_s20 }
  0x10   :  { %s212_s21 = scalar_lea.vmem %s29_s20, 512  ;;  %p217_p6 = scmp.lt.s32.totalorder %s29_s20, %s29_s20 }
  0x11   :  { %p213_p5 = scmp.ne.s32.totalorder %s29_s20, %s212_s21  ;;  %p218_p7 = scmp.lt.s32.totalorder %s212_s21, %s212_s21 }
  0x13   :  { %p219_p8 = por %p218_p7, %p217_p6 }
  0x15   :  { %p220_p9 = pnand %p219_p8, %p213_p5 }
  0x17   :  { %223 = shalt.err (!%p220_p9)
}
  0x18   :  { %34 = dma.hbm_to_vmem [thread:$0]  %s299_s1, 512, %s29_s20, [#allocation6], %s251_s15, %s251_s15, %s252_s16  }
  0x19   :  { %244 = dma.done.wait [#allocation3], 256  }
  0x1a   :  { %245 = vsyncadd [#allocation3], 4294967040 }
  0x1b   :  { %246 = dma.done.wait [#allocation6], 512  }
  0x1c   :  { %247 = vsyncadd [#allocation6], 4294966784  ;;  %vm56_vm0 = vcmask 261120   ;;  %v48_v0 = vld [vmem:[#allocation5 + $0x18] sm:$0xff]  ;;  %v47_v1 = vld [vmem:[#allocation5 + $0x10] sm:$0xff]  ;;  %vm138_vm1 = vcmask 523264  }
  0x1d   :  { %168 = vmatprep.subr.mxu0 %v48_v0  ;;  %v43_v2 = vld [vmem:[#allocation2] sm:$0xff]  ;;  %v46_v3 = vld [vmem:[#allocation5 + $0x8] sm:$0xff]  ;;  %v45_v4 = vld [vmem:[#allocation5] sm:$0xff]  ;;  %s254_s24 = smov [#allocation7]  }
  0x1e   :  { %169 = vmatpush3.msra.mxu0 %v48_v0  ;;  %176 = vmatprep.mubr.msk.f32.mxu0 %vm56_vm0, %v43_v2  ;;  %v44_v5 = vld [vmem:[#allocation2 + $0x8] sm:$0xff]  ;;  %v159_v6 = vld [vmem:[%s300_s2] ss:$0 sm:$0xff]  ;;  %s146_s25 = sshll.u32 %s254_s24, 4  ;;  %s147_s25 = int_to_ptr.vmem [resolvable:$true] %s146_s25 }
  0x1f   :  { %170 = vmatprep.subr.mxu0 %v47_v1  ;;  %s224_s26 = scalar_lea.vmem %s147_s25, 256  ;;  %p229_p11 = scmp.lt.s32.totalorder %s147_s25, %s147_s25 }
  0x20   :  { %171 = vmatpush3.msra.mxu0 %v47_v1  ;;  %p225_p10 = scmp.ne.s32.totalorder %s147_s25, %s224_s26  ;;  %p230_p12 = scmp.lt.s32.totalorder %s224_s26, %s224_s26 }
  0x21   :  { %172 = vmatprep.subr.mxu0 %v46_v3 }
  0x22   :  { %173 = vmatpush3.msra.mxu0 %v46_v3  ;;  %p231_p13 = por %p230_p12, %p229_p11 }
  0x23   :  { %174 = vmatprep.subr.mxu0 %v45_v4 }
  0x24   :  { %175 = vmatpush3.msra.mxu0 %v45_v4  ;;  %p232_p0 = pnand %p231_p13, %p225_p10 }
  0x25   :  { %177 = vmatmul.mubr.msk.f32.vlgmr.msra.gmra.mxu0 %vm56_vm0, %v44_v5 }
  0xe5   :  { %v178_v7 = vpop.f32.mrf.mxu0 }
  0xe6   :  { %v135_v8 = vadd.f32 %v178_v7, %v159_v6 }
  0xe7   :  { %v129_v9 = vpop.f32.mrf.mxu0 }
  0xe8   :  { %v130_v10 = vadd.f32 %v159_v6, %v129_v9  ;;  %140 = vst.msk [vmem:[#allocation7 + $0x8] sm:$0xff] %vm138_vm1, %v135_v8 }
  0xea   :  { %139 = vst.msk [vmem:[#allocation7] sm:$0xff] %vm138_vm1, %v130_v10 }
  0xeb   :  { %235 = shalt.err (!%p232_p0)
}
  0xec   :  { %152 = dma.vmem_to_hbm [thread:$0]  %s147_s25, 256, %s301_s3, [#allocation4], %s251_s15, %s251_s15, %s252_s16  }
  0xed   :  { %248 = dma.done.wait [#allocation4], 256  }
  0xee   :  { %249 = vsyncadd [#allocation4], 4294967040 }
  0xef   :  { %156 = vsyncpa [#allocation3], 1 }
  0xf0   :  { %157 = vsyncpa [#allocation6], 1 }
  0xf1   :  { %158 = vsyncpa [#allocation4], 1 }

</bundles_post_ra>
